<compile_context>
chip_gen: v7x
topology: tpu7x:2x2x1
jax: 0.10.0
libtpu: 0.0.40
codegen_flags: <defaults>
</compile_context>

<pallas_src>
import functools
import math

import jax
import jax.numpy as jnp
from jax.experimental import pallas as pl
from jax.experimental.pallas import tpu as pltpu


# ~4 MiB output tiles sit at the ~85%+ point of the measured HBM write
# roofline; double-buffered (8 MiB) still fits the 16 MiB v5e scoped VMEM
# default, so no vmem_limit_bytes override is needed.
_TARGET_TILE_BYTES = 4 << 20


def _pe_kernel(params_ref, o_ref):
    """Write one (tile_r, width) tile of the sinusoidal table.

    params_ref: (1, 2, width) per-tile parameters
        row 0: per-lane angle slope  f[c]
        row 1: per-lane base angle   b[c]   (already includes this tile's row
               offset and the pi/2 phase for odd columns -> cos via sin)
    Element (r, c) = sin(r * f[c] + b[c]):  one iota + convert + mul + add on
    the VPU and exactly one EUP transcendental per element.
    """
    tile_r, width = o_ref.shape
    # int32 iota + convert (float iota lowering is not guaranteed on Mosaic);
    # the tile's row offset lives in the precomputed base, so no scalar add.
    row = jax.lax.broadcasted_iota(jnp.int32, (tile_r, width), 0).astype(jnp.float32)
    p = params_ref[...]              # (1, 2, width)
    freq = p[0, 0:1, :]              # (1, width) -> broadcast over sublanes
    base = p[0, 1:2, :]              # (1, width)
    o_ref[...] = jnp.sin(row * freq + base)


def _choose_tile_rows(total_rows, row_bytes):
    """Byte-targeted tile height: ~_TARGET_TILE_BYTES per block, multiple of 8,
    and <= total_rows // 2 (so the grid has >= 2 steps and both v7x cores get
    work).  Small tables fall back to a single full-extent block."""
    if total_rows <= 8:
        return total_rows
    t = max(8, ((_TARGET_TILE_BYTES // row_bytes) // 8) * 8)
    if total_rows >= 16:
        half = ((total_rows // 2) // 8) * 8
        if half >= 8:
            t = min(t, half)
    return min(t, total_rows)


def _launch(params, total_rows, width, tile_r):
    grid_n = int(pl.cdiv(total_rows, tile_r))
    assert params.shape == (grid_n, 2, width)
    return pl.pallas_call(
        _pe_kernel,
        out_shape=jax.ShapeDtypeStruct((total_rows, width), jnp.float32),
        grid=(grid_n,),
        in_specs=[pl.BlockSpec((1, 2, width), lambda i: (i, 0, 0))],
        out_specs=pl.BlockSpec((tile_r, width), lambda i: (i, 0)),
        compiler_params=pltpu.CompilerParams(
            # Tiles are independent -> shardable across TensorCores on v7x.
            dimension_semantics=("parallel",),
        ),
    )(params)


def _build_pe_table(seq_len, d_model):
    """Build the (seq_len, d_model) float32 sinusoidal table with Pallas."""
    assert d_model % 2 == 0, "d_model must be even (matches PyTorch slicing)"

    col = jnp.arange(d_model, dtype=jnp.int32)
    two_i = ((col // 2) * 2).astype(jnp.float32)
    # Same 10000 ** (2i / d_model) as the PyTorch __init__ (power, not
    # exp/log), so the only deviation from the torch table is mul-vs-div
    # rounding of the angle (a few ulps).
    inv_freq = 1.0 / jnp.power(jnp.float32(10000.0), two_i / jnp.float32(d_model))
    phase = (col % 2).astype(jnp.float32) * jnp.float32(math.pi / 2.0)

    lane_dense_flat = (
        d_model % 128 != 0
        and 128 % d_model == 0
        and (seq_len * d_model) % 128 == 0
    )

    if lane_dense_flat:
        # d_model < 128: emit a lane-dense flattened slab (rows, 128) so every
        # store is a full unmasked 128-lane vst, then reshape (free,
        # row-major) to (seq_len, d_model) in the wrapper.
        rpp = 128 // d_model                       # table positions per slab row
        total_rows = (seq_len * d_model) // 128
        lane = jnp.arange(128, dtype=jnp.int32)
        inv_f = inv_freq[lane % d_model]           # (128,)
        ph = phase[lane % d_model]                 # (128,)
        lane_pos = (lane // d_model).astype(jnp.float32)
        freq_row = jnp.float32(rpp) * inv_f        # slab-row -> angle slope

        tile_r = _choose_tile_rows(total_rows, 128 * 4)
        grid_n = int(pl.cdiv(total_rows, tile_r))
        starts = (jnp.arange(grid_n, dtype=jnp.float32) * (tile_r * rpp))[:, None]
        base = (starts + lane_pos[None, :]) * inv_f[None, :] + ph[None, :]
        params = jnp.stack(
            [jnp.broadcast_to(freq_row, (grid_n, 128)), base], axis=1
        ).astype(jnp.float32)
        flat = _launch(params, total_rows, 128, tile_r)
        return flat.reshape(seq_len, d_model)

    # Standard (tile_s, d_model) tiling.  Lane-dense when d_model % 128 == 0;
    # otherwise falls back to masked stores (correct, perf-only penalty).
    total_rows = seq_len
    tile_r = _choose_tile_rows(total_rows, d_model * 4)
    grid_n = int(pl.cdiv(total_rows, tile_r))
    starts = (jnp.arange(grid_n, dtype=jnp.float32) * tile_r)[:, None]
    base = starts * inv_freq[None, :] + phase[None, :]
    params = jnp.stack(
        [jnp.broadcast_to(inv_freq, (grid_n, d_model)), base], axis=1
    ).astype(jnp.float32)
    return _launch(params, total_rows, d_model, tile_r)


class PositionalEncoding:
    """Mirror of the PyTorch module: the (max_len, d_model) table is built
    exactly once in __init__ (by the Pallas kernel); forward just slices."""

    def __init__(self, d_model, max_len=512):
        self.d_model = d_model
        self.max_len = max_len
        self.embedding = jax.block_until_ready(_build_pe_table(max_len, d_model))

    def __call__(self, x):
        seq_len = x.shape[1]
        return self.embedding[:seq_len, :]

    forward = __call__


@functools.lru_cache(maxsize=None)
def _cached_module(d_model, max_len):
    return PositionalEncoding(d_model, max_len)


def positional_encoding_forward(x, d_model, max_len=512):
    """Functional form.  Builds once per (d_model, max_len) and slices, so
    varying seq_len never re-triggers a pallas_call compile or table build."""
    seq_len = x.shape[1]
    assert seq_len <= max_len
    return _cached_module(d_model, max_len).embedding[:seq_len, :]


def _reference_pe(seq_len, d_model):
    """Pure-JAX reference mirroring the PyTorch __init__ table construction."""
    pos = jnp.arange(seq_len, dtype=jnp.float32)[:, None]
    _2i = jnp.arange(0, d_model, 2, dtype=jnp.float32)
    div = jnp.power(jnp.float32(10000.0), _2i / jnp.float32(d_model))
    pe = jnp.zeros((seq_len, d_model), dtype=jnp.float32)
    pe = pe.at[:, 0::2].set(jnp.sin(pos / div))
    pe = pe.at[:, 1::2].set(jnp.cos(pos / div))
    return pe


if __name__ == "__main__":
    key = jax.random.PRNGKey(0)

    # Small shapes consistent with the module: (batch, seq, d_model).
    batch, seq_len, d_small = 2, 8, 32
    x = jax.random.normal(key, (batch, seq_len, d_small), dtype=jnp.float32)

    # Functional path: d_model=32 < 128 -> lane-dense flattened slab, grid=2.
    out = jax.block_until_ready(positional_encoding_forward(x, d_small, max_len=64))
    ref = _reference_pe(seq_len, d_small)
    assert out.shape == (seq_len, d_small) and out.dtype == jnp.float32
    assert jnp.allclose(out, ref, atol=1e-4, rtol=1e-5), "mismatch (flat path)"

    # Module path: d_model multiple of 128 -> lane-dense 2-D tiles, grid of 3
    # with a ragged (masked) last tile; forward slices to seq_len.
    pe_mod = PositionalEncoding(128, max_len=40)
    pos = jax.block_until_ready(pe_mod(jnp.zeros((2, 24, 128), jnp.float32)))
    assert pos.shape == (24, 128)
    assert jnp.allclose(pos, _reference_pe(24, 128), atol=2e-4, rtol=1e-5), \
        "mismatch (2-D tiled path)"

    # Flattened path with a multi-step grid and ragged last tile.
    tbl = jax.block_until_ready(_build_pe_table(200, 64))
    assert tbl.shape == (200, 64)
    assert jnp.allclose(tbl, _reference_pe(200, 64), atol=5e-4, rtol=1e-5), \
        "mismatch (flat tiled path)"

    print("KERNEL_OK")
</pallas_src>

<mosaic_0001>
module attributes {stable_mosaic.version = 11 : i64} {
  func.func @_pe_kernel(%arg0: i32, %arg1: memref<1x2x128xf32, #tpu.memory_space<vmem>>, %arg2: memref<8x128xf32, #tpu.memory_space<vmem>>) attributes {dimension_semantics = [#tpu.dimension_semantics<parallel>], iteration_bounds = array<i64: 2>, scalar_prefetch = 0 : i64, scratch_operands = 0 : i64, tpu.core_type = #tpu.core_type<tc>, window_params = [{transform_indices = @transform_0, window_bounds = array<i64: 1, 2, 128>}, {transform_indices = @transform_1, window_bounds = array<i64: 8, 128>}]} {
    %0 = tpu.iota {dimensions = array<i32: 0>} : vector<8x128xi32>
    %1 = arith.sitofp %0 : vector<8x128xi32> to vector<8x128xf32>
    %c0 = arith.constant 0 : index
    %c0_0 = arith.constant 0 : index
    %c0_1 = arith.constant 0 : index
    %2 = vector.load %arg1[%c0, %c0_0, %c0_1] : memref<1x2x128xf32, #tpu.memory_space<vmem>>, vector<1x2x128xf32>
    %3 = vector.extract_strided_slice %2 {offsets = [0, 0, 0], sizes = [1, 1, 128], strides = [1, 1, 1]} : vector<1x2x128xf32> to vector<1x1x128xf32>
    %4 = vector.shape_cast %3 : vector<1x1x128xf32> to vector<1x128xf32>
    %5 = vector.extract_strided_slice %2 {offsets = [0, 1, 0], sizes = [1, 1, 128], strides = [1, 1, 1]} : vector<1x2x128xf32> to vector<1x1x128xf32>
    %6 = vector.shape_cast %5 : vector<1x1x128xf32> to vector<1x128xf32>
    %7 = vector.broadcast %4 : vector<1x128xf32> to vector<8x128xf32>
    %8 = arith.mulf %1, %7 : vector<8x128xf32>
    %9 = vector.broadcast %6 : vector<1x128xf32> to vector<8x128xf32>
    %10 = arith.addf %8, %9 : vector<8x128xf32>
    %11 = math.sin %10 : vector<8x128xf32>
    %c0_2 = arith.constant 0 : index
    %c0_3 = arith.constant 0 : index
    %12 = vector.load %arg2[%c0_2, %c0_3] : memref<8x128xf32, #tpu.memory_space<vmem>>, vector<8x128xf32>
    tpu.vector_store %arg2[%c0_2, %c0_3], %11 {strides = array<i32>} : memref<8x128xf32, #tpu.memory_space<vmem>>, vector<8x128xf32>,
    return
  }
  func.func @transform_0(%arg0: i32) -> (i32, i32, i32) {
    %c0_i32 = arith.constant 0 : i32
    %c0_i32_0 = arith.constant 0 : i32
    %c0_i32_1 = arith.constant 0 : i32
    return %arg0, %c0_i32, %c0_i32_0 : i32, i32, i32
  }
  func.func @transform_1(%arg0: i32) -> (i32, i32) {
    %c0_i32 = arith.constant 0 : i32
    %c0_i32_0 = arith.constant 0 : i32
    return %arg0, %c0_i32 : i32, i32
  }
}

</mosaic_0001>

<bundles_post_ra>
// kernel: tpu_custom_call.1
= control target key start
LH: loop header
LB: loop body
LE: loop exit
PB: predicated region body
PF: predicated region fallthrough
CT: control target
= control target key end

     0   :  { %6 = vsyncpa [#allocation3], 0  ;;  %s710_s0 = inlined_call_operand.hbm [shape: f32[2,2,128], index: 0, kind: input, shape index: {}]   ;;  %s711_s1 = inlined_call_operand.hbm [shape: f32[16,128], index: 1, kind: output, shape index: {}]  }
   0x1   :  { %8 = vsyncpa [#allocation3 + $0x1], 0 }
   0x2   :  { %9 = vsyncpa [#allocation4], 0 }
   0x3   :  { %11 = vsyncpa [#allocation4 + $0x1], 0  ;;  %s527_s6 = smov 0   ;;  %s529_s7 = smov 0  }
   0x4   :  { %s531_s8 = smov 0   ;;  %s533_s9 = smov 0  }
   0x5 LB: > { %s548_s10 = sadd.s32 4294967295, %s507_s9   ;;  %s335_s11 = sadd.s32 4294967294, %s507_s9   ;;  %s507_s9 = sphi %s533_s9, %s726_s9   ;;  %s503_s8 = sphi %s531_s8, %s725_s8   ;;  %s499_s7 = sphi %s529_s7, %s724_s7   ;;  %s495_s6 = sphi %s527_s6, %s723_s6  }
   0x6   : > { %s552_s12 = sadd.s32 1, %s507_s9   ;;  %s24_s13 = sadd.s32 1, %s503_s8 }
   0x7   : > { %s21_s14 = ssub.s32 %s507_s9, %s552_s12  ;;  %p31_p0 = scmp.ne.s32.totalorder %s503_s8, %s499_s7 }
   0x8   : > { %p22_p1 = scmp.eq.s32.totalorder %s21_s14, 0  ;;  %p32_p2 = scmp.eq.s32.totalorder %s507_s9, 0 }
   0x9   : > { %p37_p3 = scmp.ne.s32.totalorder %s499_s7, %s495_s6  ;;  %p38_p4 = scmp.eq.s32.totalorder %s548_s10, 0 }
   0xa   : > { %s564_s15 = scalar_select %p22_p1, %s503_s8, %s24_s13  }
   0xb   : > { %p566_p5 = por %p32_p2, %p31_p0  ;;  %p570_p6 = por %p38_p4, %p37_p3 }
   0xc   : > { %p61_p7 = scmp.eq.s32.totalorder %s548_s10, 1  ;;  %p67_p8 = scmp.eq.s32.totalorder %s335_s11, 1 }
   0xd   : > { %p367_p10 = scmp.lt.s32.totalorder %s507_s9, 2  ;;  %s87_s20 = sand.u32 1, %s503_s8  }
   0xe   : > { %p577_p11 = por %p61_p7, %p31_p0  ;;  %p581_p12 = por %p67_p8, %p37_p3 }
   0xf   : > { %s339_s21 = sshll.u32 %s507_s9, 5  ;;  %s338_s22 = sshll.u32 %s87_s20, 1 }
  0x10   : > { %s715_s18 = scalar_select %p577_p11, 1, 0 }
  0x11   : > { %s716_s19 = scalar_select %p581_p12, 1, 0 }
  0x12   : > { %s590_s25 = scalar_lea.hbm %s710_s0, %s339_s21  ;;  %s91_s26 = scalar_lea.vmem [#allocation2], %s338_s22 }
  0x13   : > { %s98_s27 = sshll.u32 %s91_s26, 4  ;;  %p594_p13 = pnand %p367_p10, %p566_p5  ;;  %s598_s27 = int_to_ptr.vmem [resolvable:$true] %s98_s27 }
  0x14   : > { %s88_s29 = scalar_lea.sflag [#allocation3], %s87_s20  ;;  %s411_s30 = scalar_lea.hbm %s590_s25, 32 }
  0x15   : > { %p412_p2 = scmp.ne.s32.totalorder %s590_s25, %s411_s30  ;;  %p413_p3 = pneg %p594_p13 }
  0x16   : > { %s416_s4 = scalar_lea.hbm %s710_s0, 64  ;;  %p417_p5 = scmp.lt.u32.totalorder %s590_s25, %s710_s0 }
  0x17   : > { %p414_p4 = pnand %p413_p3, %p412_p2  ;;  %p418_p8 = scmp.lt.u32.totalorder %s416_s4, %s411_s30 }
  0x18   : > { %p420_p9 = scmp.lt.u32.totalorder %s411_s30, %s590_s25 }
  0x19   : > { %p415_p7 = pneg %p414_p4  ;;  %p419_p10 = por %p418_p8, %p417_p5 }
  0x1b   : > { %p421_p0 = por %p420_p9, %p419_p10 }
  0x1d   : > { %p422_p1 = pnand %p421_p0, %p415_p7 }
  0x1f   : > { %425 = shalt.err (!%p422_p1)
}
  0x20   : > { %s426_s13 = scalar_lea.vmem %s598_s27, 32  ;;  %s509_s14 = smov [#allocation2]  }
  0x21   : > { %p427_p2 = scmp.ne.s32.totalorder %s598_s27, %s426_s13  ;;  %s431_s16 = sshll.u32 %s509_s14, 4  ;;  %s432_s16 = int_to_ptr.vmem [resolvable:$false] %s431_s16 }
  0x22   : > { %s433_s20 = scalar_lea.vmem %s432_s16, 64  ;;  %p434_p11 = scmp.lt.s32.totalorder %s598_s27, %s432_s16 }
  0x23   : > { %p429_p4 = pnand %p427_p2, %p413_p3  ;;  %p435_p5 = scmp.lt.s32.totalorder %s433_s20, %s426_s13 }
  0x25   : > { %p430_p12 = pneg %p429_p4  ;;  %p436_p8 = por %p435_p5, %p434_p11 }
  0x27   : > { %p437_p9 = pnand %p436_p8, %p430_p12 }
  0x29   : > { %440 = shalt.err (!%p437_p9)
}
  0x2a   : > { %362 = dma.hbm_to_vmem [thread:$0]  (!%p594_p13), %s590_s25, 32, %s598_s27, %s88_s29  }
  0x2b   : > { %p718_p0 = scmp.lt.s32.totalorder %s507_s9, 3  ;;  %p719_p1 = scmp.ge.s32.totalorder %s507_s9, 1 }
  0x2d   : > { %p104_p3 = pnand %p719_p1, %p718_p0 }
  0x2e   : > { %s632_s21 = sand.u32 (!%p104_p3), 1, %s499_s7  }
  0x2f   : > { %107 = sbr.rel (%p104_p3) target bundleno = 161 (0xa1), region = 24  ;;  %s341_s22 = sshll.u32 (!%p104_p3), %s632_s21, 1 }
  0x30   : > { %s110_s23 = scalar_lea.sflag (!%p104_p3), [#allocation3], %s632_s21  ;;  %s113_s24 = scalar_lea.vmem (!%p104_p3), [#allocation2], %s341_s22 }
  0x36   : > { %486 = dma.done.wait (%p570_p6), %s110_s23, 32  }
  0x37   : > { %488 = vsyncadd (%p570_p6), %s110_s23, 4294967264  ;;  %v132_v0 = vlaneseq  ;;  %v135_v5 = vld [vmem:[%s113_s24] sm:$0x3]  ;;  %v510_v21 = vmov 683565275   ;;  %s342_s17 = sshll.u32 %s632_s21, 3 }
  0x38   : > { %v511_v23 = vmov 2475754826   ;;  %v512_v25 = vmov 2131351028   ;;  %v513_v27 = vmov 2102212464  }
  0x39   : > { %v133_v1 = vshrl.u32 %v132_v0, 7  ;;  %v514_v29 = vmov 920167782   ;;  %v515_v36 = vmov 1326507024   ;;  %s131_s25 = scalar_lea.vmem [#allocation5], %s342_s17 }
  0x3a   : > { %s265_s26 = sshll.u32 %s131_s25, 4  ;;  %s348_s27 = sshll.u32 %s548_s10, 7  ;;  %s663_s26 = int_to_ptr.vmem [resolvable:$true] %s265_s26 }
  0x3b   : > { %v138_v2 = vsub.s32 0, %v133_v1  ;;  %v143_v3 = vsub.s32 1, %v133_v1  ;;  %v134_v4 = vcvt.s32.f32 %v133_v1  ;;  %s668_s30 = scalar_lea.hbm %s711_s1, %s348_s27  ;;  %s252_s2 = scalar_lea.sflag [#allocation4], %s632_s21 }
  0x3c   : > { %s441_s3 = scalar_lea.vmem %s663_s26, 128  ;;  %p720_p11 = scmp.ne.s32.totalorder %s715_s18, 0 }
  0x3d   : > { %v139_v6 = vrot.slane %v135_v5, %v138_v2  ;;  %v144_v7 = vrot.slane %v135_v5, %v143_v3  ;;  %p442_p6 = scmp.ne.s32.totalorder %s663_s26, %s441_s3  ;;  %s516_s10 = smov [#allocation5]  }
  0x3e   : > { %s445_s4 = sshll.u32 %s516_s10, 4  ;;  %s446_s4 = int_to_ptr.vmem [resolvable:$false] %s445_s4 }
  0x3f   : > { %v140_v8 = vmul.f32 %v139_v6, %v134_v4  ;;  %p443_p12 = pnand %p442_p6, %p720_p11  ;;  %s447_s5 = scalar_lea.vmem %s446_s4, 256 }
  0x40   : > { %p448_p7 = scmp.lt.s32.totalorder %s663_s26, %s446_s4  ;;  %p449_p10 = scmp.lt.s32.totalorder %s447_s5, %s441_s3 }
  0x41   : > { %v640_v9 = vadd.f32 %v144_v7, %v140_v8  ;;  %p444_p13 = pneg %p443_p12 }
  0x42   : > { %p450_p2 = por %p449_p10, %p448_p7 }
  0x43   : > { %v149_v10 = vand.u32 2139095040, %v640_v9  ;;  %v146_v12 = vand.u32 2147483647, %v640_v9  ;;  %vm148_vm7 = vcmp.lt.s32.totalorder %v640_v9, 0  ;;  %vm238_vm12 = vweird.f32 %v640_v9 }
  0x44   : > { %p451_p4 = pnand %p450_p2, %p444_p13 }
  0x45   : > { %v150_v11 = vshrl.u32 %v149_v10, 23  ;;  %v153_v15 = vand.u32 8388607, %v146_v12  ;;  %vm147_vm8 = vcmp.le.f32.partialorder %v146_v12, 0.7853982 }
  0x47   : > { %v343_v13 = vadd.s32 4294967169, %v150_v11  ;;  %v154_v18 = vor.u32 8388608, %v153_v15 }
  0x49   : > { %v156_v14 = vadd.s32 1, %v343_v13  ;;  %v194_v38 = vshll.u32 %v154_v18, 8 }
  0x4b   : > { %vm157_vm0 = vcmp.gt.s32.totalorder %v156_v14, 0 }
  0x4c   : > { %v158_v16 = vsel %vm157_vm0, %v156_v14, 0 }
  0x4d   : > { %v160_v17 = vand.u32 31, %v158_v16  ;;  %v159_v19 = vshrl.u32 %v158_v16, 5 }
  0x4f   : > { %v161_v20 = vsub.s32 32, %v160_v17  ;;  %v163_v22 = vshll.u32 %v510_v21, %v160_v17  ;;  %v166_v24 = vshll.u32 %v511_v23, %v160_v17  ;;  %v169_v26 = vshll.u32 %v512_v25, %v160_v17 }
  0x50   : > { %v172_v28 = vshll.u32 %v513_v27, %v160_v17  ;;  %v175_v30 = vshll.u32 %v514_v29, %v160_v17  ;;  %vm178_vm1 = vcmp.lt.s32.totalorder %v159_v19, 1  ;;  %vm181_vm2 = vcmp.lt.s32.totalorder %v159_v19, 4 }
  0x51   : > { %v162_v31 = vshrl.u32 %v510_v21, %v161_v20  ;;  %v164_v32 = vshrl.u32 %v511_v23, %v161_v20  ;;  %v167_v33 = vshrl.u32 %v512_v25, %v161_v20  ;;  %v170_v34 = vshrl.u32 %v513_v27, %v161_v20 }
  0x52   : > { %v173_v35 = vshrl.u32 %v514_v29, %v161_v20  ;;  %v176_v37 = vshrl.u32 %v515_v36, %v161_v20  ;;  %vm179_vm3 = vcmp.lt.s32.totalorder %v159_v19, 2  ;;  %vm180_vm4 = vcmp.lt.s32.totalorder %v159_v19, 3 }
  0x53   : > { %v165_v39 = vor.u32 %v164_v32, %v163_v22  ;;  %v168_v40 = vor.u32 %v167_v33, %v166_v24  ;;  %v171_v41 = vor.u32 %v170_v34, %v169_v26 }
  0x54   : > { %v174_v42 = vor.u32 %v173_v35, %v172_v28  ;;  %v177_v43 = vor.u32 %v176_v37, %v175_v30 }
  0x55   : > { %v182_v44 = vsel %vm178_vm1, %v162_v31, %v165_v39  ;;  %v183_v45 = vsel %vm181_vm2, %v171_v41, 2102212464  ;;  %v186_v46 = vsel %vm178_vm1, %v165_v39, %v168_v40  ;;  %v190_v47 = vsel %vm178_vm1, %v168_v40, %v171_v41 }
  0x56   : > { %v184_v48 = vsel %vm180_vm4, %v168_v40, %v183_v45  ;;  %v187_v49 = vsel %vm181_vm2, %v174_v42, 920167782  ;;  %v191_v50 = vsel %vm181_vm2, %v177_v43, 1326507024 }
  0x57   : > { %v188_v51 = vsel %vm180_vm4, %v171_v41, %v187_v49  ;;  %v192_v52 = vsel %vm180_vm4, %v174_v42, %v191_v50  ;;  %v185_v53 = vsel %vm179_vm3, %v182_v44, %v184_v48 }
  0x58   : > { %v189_v54 = vsel %vm179_vm3, %v186_v46, %v188_v51  ;;  %v193_v55 = vsel %vm179_vm3, %v190_v47, %v192_v52  ;;  %v201_v60 = vmul.u32 %v194_v38, %v185_v53 }
  0x59   : > { %v646_v56 = vmul.u32.u64.low %v194_v38, %v193_v55  ;;  %v647_v57 = vmul.u32.u64.high %v194_v38, %v193_v55, %v646_v56  ;;  %v649_v58 = vmul.u32.u64.low %v194_v38, %v189_v54  ;;  %v650_v59 = vmul.u32.u64.high %v194_v38, %v189_v54, %v649_v58 }
  0x5b   : > { %vm203_vm5 = vc.u32 %v647_v57, %v649_v58  ;;  %v204_v61 = vadd.s32 1, %v650_v59  ;;  %v202_v8 = vadd.s32 %v649_v58, %v647_v57 }
  0x5d   : > { %v205_v62 = vsel %vm203_vm5, %v204_v61, %v650_v59 }
  0x5e   : > { %v206_v63 = vadd.s32 %v205_v62, %v201_v60 }
  0x60   : > { %v207_v0 = vadd.s32 536870912, %v206_v63 }
  0x62   : > { %v208_v1 = vshrl.u32 %v207_v0, 30 }
  0x64   : > { %v209_v2 = vshll.u32 %v208_v1, 30  ;;  %v232_v22 = vsub.s32 4, %v208_v1 }
  0x66   : > { %v210_v3 = vsub.s32 %v206_v63, %v209_v2  ;;  %v233_v25 = vsel %vm148_vm7, %v232_v22, %v208_v1 }
  0x67   : > { %v235_v28 = vsel %vm147_vm8, 0, %v233_v25 }
  0x68   : > { %v212_v4 = vsub.s32 0, %v210_v3  ;;  %v239_v29 = vadd.s32 3, %v235_v28 }
  0x6a   : > { %v344_v5 = vmin.u32 %v212_v4, %v210_v3  ;;  %v240_v30 = vand.u32 3, %v239_v29 }
  0x6c   : > { %v214_v6 = vclz %v344_v5  ;;  %vm245_vm9 = vcmp.eq.s32.totalorder %v240_v30, 2  ;;  %vm242_vm10 = vcmp.eq.s32.totalorder %v240_v30, 0  ;;  %vm241_vm11 = vcmp.lt.s32.totalorder %v240_v30, 2 }
  0x6e   : > { %v345_v7 = vadd.s32 4294967294, %v214_v6 }
  0x70   : > { %vm346_vm6 = vcmp.lt.s32.totalorder %v345_v7, 0 }
  0x71   : > { %v217_v10 = vsel %vm346_vm6, 0, %v345_v7 }
  0x72   : > { %v218_v11 = vsub.s32 32, %v217_v10  ;;  %v219_v13 = vshll.u32 %v210_v3, %v217_v10  ;;  %v222_v14 = vsub.s32 4294967266, %v217_v10 }
  0x74   : > { %v220_v15 = vshrl.u32 %v202_v8, %v218_v11  ;;  %v223_v16 = vadd.s32 127, %v222_v14 }
  0x76   : > { %v221_v17 = vor.u32 %v220_v15, %v219_v13  ;;  %v224_v18 = vshll.u32 %v223_v16, 23 }
  0x78   : > { %v225_v19 = vor.u32 4788187, %v224_v18  ;;  %v228_v20 = vcvt.s32.f32 %v221_v17 }
  0x7a   : > { %v226_v21 = vand.u32 2147483647, %v225_v19 }
  0x7c   : > { %v229_v23 = vmul.f32 %v228_v20, %v226_v21 }
  0x7e   : > { %v230_v24 = vxor.u32 2147483648, %v229_v23 }
  0x80   : > { %v231_v26 = vsel %vm148_vm7, %v230_v24, %v229_v23 }
  0x81   : > { %v234_v27 = vsel %vm147_vm8, %v640_v9, %v231_v26 }
  0x82   : > { %407 = vcosq.f32 %v234_v27 }
  0x83   : > { %409 = vsinq.f32 %v234_v27 }
  0x8c   : > { %v408_v31 = vpop.eup %407 }
  0x8d   : > { %v410_v32 = vpop.eup %409  ;;  %v246_v33 = vxor.u32 2147483648, %v408_v31 }
  0x8e   : > { %v243_v12 = vxor.u32 2147483648, %v410_v32 }
  0x8f   : > { %v247_v34 = vsel %vm245_vm9, %v246_v33, %v410_v32 }
  0x90   : > { %v244_v35 = vsel %vm242_vm10, %v408_v31, %v243_v12 }
  0x91   : > { %v248_v36 = vsel %vm241_vm11, %v244_v35, %v247_v34 }
  0x92   : > { %v249_v37 = vsel %vm238_vm12, nan, %v248_v36 }
  0x93   : > { %250 = vst [vmem:[%s131_s25] sm:$0xff] %v249_v37 }
  0x94   : > { %454 = shalt.err (!%p451_p4)
}
  0x95   : > { %s455_s11 = scalar_lea.hbm %s668_s30, 128  ;;  %s459_s16 = scalar_lea.hbm %s711_s1, 256 }
  0x96   : > { %p456_p5 = scmp.ne.s32.totalorder %s668_s30, %s455_s11  ;;  %p460_p0 = scmp.lt.u32.totalorder %s668_s30, %s711_s1 }
  0x97   : > { %p461_p1 = scmp.lt.u32.totalorder %s459_s16, %s455_s11  ;;  %p463_p6 = scmp.lt.u32.totalorder %s455_s11, %s668_s30 }
  0x98   : > { %p457_p8 = pnand %p456_p5, %p720_p11 }
  0x99   : > { %p462_p3 = por %p461_p1, %p460_p0 }
  0x9a   : > { %p458_p9 = pneg %p457_p8 }
  0x9b   : > { %p464_p12 = por %p463_p6, %p462_p3 }
  0x9d   : > { %p465_p13 = pnand %p464_p12, %p458_p9 }
  0x9f   : > { %468 = shalt.err (!%p465_p13)
}
  0xa0   : > { %357 = dma.vmem_to_hbm [thread:$0]  (%p720_p11), %s663_s26, 128, %s668_s30, %s252_s2  }
  0xa1 PF: > { %s277_s22 = sand.u32 1, %s495_s6   ;;  %p721_p7 = scmp.ne.s32.totalorder %s716_s19, 0 }
  0xa2   : > { %p722_p10 = scmp.ge.s32.totalorder %s507_s9, 2  ;;  %s278_s23 = scalar_lea.sflag [#allocation4], %s277_s22 }
  0xa4   : > { %p364_p2 = pnand %p722_p10, %p721_p7 }
  0xa6   : > { %490 = dma.done.wait (!%p364_p2), %s278_s23, 128  }
  0xa7   : > { %492 = vsyncadd (!%p364_p2), %s278_s23, 4294967168  ;;  %p14_p4 = scmp.ge.s32.totalorder %s552_s12, 4   ;;  %s723_s6 = smov %s499_s7 }
  0xa8   : > { %s724_s7 = smov %s503_s8  ;;  %s725_s8 = smov %s564_s15 }
  0xa9   : > { %s726_s9 = smov %s552_s12  ;;  %16 = sbr.rel (!%p14_p4) target bundleno = 5 (0x5), region = 69 }
  0xb0   :  { %283 = vsyncpa [#allocation3], 1 }
  0xb1   :  { %285 = vsyncpa [#allocation3 + $0x1], 1 }
  0xb2   :  { %286 = vsyncpa [#allocation4], 1 }
  0xb3   :  { %288 = vsyncpa [#allocation4 + $0x1], 1 }

</bundles_post_ra>
